<compile_context>
chip_gen: v5e
topology: v5e:2x2
jax: 0.10.0
libtpu: 0.0.40
codegen_flags: <defaults>
</compile_context>

<pallas_src>
import jax
import jax.numpy as jnp
from jax.experimental import pallas as pl
from jax.experimental.pallas import tpu as pltpu


def _make_kernel(num_classes: int):
    binary = (num_classes == 2)

    def kernel(emb_ref, mask_ref, w_ref, b_ref, out_ref, psum_ref, den_ref):
        j = pl.program_id(1)                       # sequence (reduction) axis

        @pl.when(j == 0)
        def _init():
            psum_ref[...] = jnp.zeros_like(psum_ref)
            den_ref[...] = jnp.zeros_like(den_ref)

        emb = emb_ref[...].astype(jnp.float32)     # (TB, TS, H) bf16 -> f32
        mask = mask_ref[...]                       # (TB, TS, 1) f32 (lane splat)

        # Streamed masked-sum accumulation into f32 scratch.
        psum_ref[...] += jnp.sum(emb * mask, axis=1)   # (TB, H)
        den_ref[...] += jnp.sum(mask, axis=1)          # (TB, 1)

        @pl.when(j == pl.num_programs(1) - 1)
        def _finish():
            pooled = psum_ref[...] / jnp.maximum(den_ref[...], 1.0)   # (TB, H)
            if binary:
                # w_ref: (1, H) = W[:,1]-W[:,0] ; b_ref: (1, 1) = b[1]-b[0]
                logit = jnp.sum(pooled * w_ref[...], axis=-1,
                                keepdims=True) + b_ref[...]            # (TB, 1)
                out_ref[...] = 1.0 / (1.0 + jnp.exp(-logit))           # == softmax[:,1]
            else:
                logits = jnp.dot(pooled, w_ref[...],
                                 preferred_element_type=jnp.float32) + b_ref[...]
                m = jnp.max(logits, axis=1, keepdims=True)
                e = jnp.exp(logits - m)
                out_ref[...] = e[:, 1:2] / jnp.sum(e, axis=1, keepdims=True)

    return kernel


def _pick_tile(total: int, max_tile: int, align: int) -> int:
    """Largest tile <= max_tile that divides `total` and is `align`-aligned
    (or the whole axis, which always satisfies the layout rule)."""
    if total <= max_tile:
        return total
    t = (max_tile // align) * align
    while t >= align:
        if total % t == 0:
            return t
        t -= align
    return total


def logistic_model_forward(input_ids, attention_mask, embedding, head_w, head_b):
    """input_ids: (B, S) int32; attention_mask: (B, S) int/float.
    embedding: (V, H); head_w: (H, C); head_b: (C,).
    Returns: (B,) f32 probability of class 1 (== softmax(logits, dim=1)[:, 1])."""
    B, S = input_ids.shape
    H = embedding.shape[1]
    C = head_w.shape[1]

    # Glue: per-token gather stays in plain JAX; keep activations bf16 in HBM.
    emb = jnp.take(embedding.astype(jnp.bfloat16), input_ids, axis=0)     # (B, S, H) bf16
    mask3 = attention_mask.astype(jnp.float32).reshape(B, S, 1)           # (B, S, 1)

    if C == 2:
        w_arg = (head_w[:, 1] - head_w[:, 0]).astype(jnp.float32).reshape(1, H)
        b_arg = (head_b[1] - head_b[0]).astype(jnp.float32).reshape(1, 1)
    else:
        w_arg = head_w.astype(jnp.float32)                                # (H, C)
        b_arg = head_b.astype(jnp.float32).reshape(1, C)

    # Tile sizes: batch tile 8-aligned (output block rule); sequence tile sized
    # so a double-buffered bf16 emb tile stays ~<= 2 MiB (safe on all of
    # v5e/v6e/v7x default scoped-VMEM limits).
    TB = _pick_tile(B, 128, 8)
    max_ts = max(16, (2 << 20) // max(1, TB * H * 2))
    TS = _pick_tile(S, max_ts, 16)
    grid = (B // TB, S // TS)

    kernel = _make_kernel(C)
    out = pl.pallas_call(
        kernel,
        out_shape=jax.ShapeDtypeStruct((B, 1), jnp.float32),
        grid_spec=pltpu.PrefetchScalarGridSpec(
            num_scalar_prefetch=0,
            grid=grid,
            in_specs=[
                pl.BlockSpec((TB, TS, H), lambda i, j: (i, j, 0)),   # emb tile
                pl.BlockSpec((TB, TS, 1), lambda i, j: (i, j, 0)),   # mask tile
                pl.BlockSpec(w_arg.shape, lambda i, j: (0, 0)),      # head weights (resident)
                pl.BlockSpec(b_arg.shape, lambda i, j: (0, 0)),      # head bias (resident)
            ],
            out_specs=pl.BlockSpec((TB, 1), lambda i, j: (i, 0)),
            scratch_shapes=[
                pltpu.VMEM((TB, H), jnp.float32),   # pooled_sum accumulator
                pltpu.VMEM((TB, 1), jnp.float32),   # mask-count accumulator
            ],
        ),
        compiler_params=pltpu.CompilerParams(
            dimension_semantics=("parallel", "arbitrary"),
        ),
    )(emb, mask3, w_arg, b_arg)
    return out[:, 0]


def _reference(input_ids, attention_mask, embedding, head_w, head_b):
    # Mirrors the kernel's data policy: bf16 activations, f32 accumulation/head.
    emb = jnp.take(embedding.astype(jnp.bfloat16), input_ids,
                   axis=0).astype(jnp.float32)
    mask = attention_mask.astype(jnp.float32)
    pooled = (emb * mask[:, :, None]).sum(axis=1) / jnp.maximum(
        mask.sum(axis=1, keepdims=True), 1.0)
    logits = pooled @ head_w.astype(jnp.float32) + head_b.astype(jnp.float32)[None, :]
    return jax.nn.softmax(logits, axis=1)[:, 1]


if __name__ == "__main__":
    # Small deterministic setup.
    B, S, H, V, C = 2, 8, 32, 64, 2
    key = jax.random.PRNGKey(0)
    k_ids, k_emb, k_w, k_b = jax.random.split(key, 4)

    input_ids = jax.random.randint(k_ids, (B, S), 0, V, dtype=jnp.int32)
    attention_mask = jnp.array(
        [[1] * S, [1] * (S - 3) + [0] * 3], dtype=jnp.int32)             # (B, S)

    embedding = jax.random.normal(k_emb, (V, H), dtype=jnp.float32) * 0.1
    head_w = jax.random.normal(k_w, (H, C), dtype=jnp.float32) * 0.1
    head_b = jax.random.normal(k_b, (C,), dtype=jnp.float32) * 0.1

    y_pred = logistic_model_forward(input_ids, attention_mask,
                                    embedding, head_w, head_b)
    jax.block_until_ready(y_pred)

    y_ref = _reference(input_ids, attention_mask, embedding, head_w, head_b)
    assert y_pred.shape == (B,)
    assert jnp.allclose(y_pred, y_ref, atol=1e-5, rtol=1e-5), (y_pred, y_ref)

    print("KERNEL_OK")
</pallas_src>

<mosaic_0001>
module attributes {stable_mosaic.version = 11 : i64} {
  func.func @kernel(%arg0: i32, %arg1: i32, %arg2: memref<2x8x32xbf16, #tpu.memory_space<vmem>>, %arg3: memref<2x8x1xf32, #tpu.memory_space<vmem>>, %arg4: memref<1x32xf32, #tpu.memory_space<vmem>>, %arg5: memref<1x1xf32, #tpu.memory_space<vmem>>, %arg6: memref<2x1xf32, #tpu.memory_space<vmem>>, %arg7: memref<2x32xf32, #tpu.memory_space<vmem>>, %arg8: memref<2x1xf32, #tpu.memory_space<vmem>>) attributes {dimension_semantics = [#tpu.dimension_semantics<parallel>, #tpu.dimension_semantics<arbitrary>], iteration_bounds = array<i64: 1, 1>, scalar_prefetch = 0 : i64, scratch_operands = 2 : i64, tpu.core_type = #tpu.core_type<tc>, window_params = [{transform_indices = @transform_0, window_bounds = array<i64: 2, 8, 32>}, {transform_indices = @transform_1, window_bounds = array<i64: 2, 8, 1>}, {pipeline_mode = #tpu.pipeline_mode<synchronous>, transform_indices = @transform_2, window_bounds = array<i64: 1, 32>}, {pipeline_mode = #tpu.pipeline_mode<synchronous>, transform_indices = @transform_3, window_bounds = array<i64: 1, 1>}, {transform_indices = @transform_4, window_bounds = array<i64: 2, 1>}]} {
    %c0_i32 = arith.constant 0 : i32
    %0 = arith.cmpi eq, %arg1, %c0_i32 : i32
    %1 = arith.extui %0 : i1 to i32
    %c0_i32_0 = arith.constant 0 : i32
    %2 = arith.cmpi ne, %1, %c0_i32_0 : i32
    scf.if %2 {
      %cst_17 = arith.constant 0.000000e+00 : f32
      %19 = vector.broadcast %cst_17 : f32 to vector<2x32xf32>
      %c0_18 = arith.constant 0 : index
      %c0_19 = arith.constant 0 : index
      %20 = vector.load %arg7[%c0_18, %c0_19] : memref<2x32xf32, #tpu.memory_space<vmem>>, vector<2x32xf32>
      tpu.vector_store %arg7[%c0_18, %c0_19], %19 {strides = array<i32>} : memref<2x32xf32, #tpu.memory_space<vmem>>, vector<2x32xf32>,
      %cst_20 = arith.constant 0.000000e+00 : f32
      %21 = vector.broadcast %cst_20 : f32 to vector<2x1xf32>
      %c0_21 = arith.constant 0 : index
      %c0_22 = arith.constant 0 : index
      %22 = vector.load %arg8[%c0_21, %c0_22] : memref<2x1xf32, #tpu.memory_space<vmem>>, vector<2x1xf32>
      tpu.vector_store %arg8[%c0_21, %c0_22], %21 {strides = array<i32>} : memref<2x1xf32, #tpu.memory_space<vmem>>, vector<2x1xf32>,
    } else {
    }
    %c0 = arith.constant 0 : index
    %c0_1 = arith.constant 0 : index
    %c0_2 = arith.constant 0 : index
    %3 = vector.load %arg2[%c0, %c0_1, %c0_2] : memref<2x8x32xbf16, #tpu.memory_space<vmem>>, vector<2x8x32xbf16>
    %4 = arith.extf %3 : vector<2x8x32xbf16> to vector<2x8x32xf32>
    %c0_3 = arith.constant 0 : index
    %c0_4 = arith.constant 0 : index
    %c0_5 = arith.constant 0 : index
    %5 = vector.load %arg3[%c0_3, %c0_4, %c0_5] : memref<2x8x1xf32, #tpu.memory_space<vmem>>, vector<2x8x1xf32>
    %c0_6 = arith.constant 0 : index
    %c0_7 = arith.constant 0 : index
    %6 = vector.load %arg7[%c0_6, %c0_7] : memref<2x32xf32, #tpu.memory_space<vmem>>, vector<2x32xf32>
    %7 = vector.broadcast %5 : vector<2x8x1xf32> to vector<2x8x32xf32>
    %8 = arith.mulf %4, %7 : vector<2x8x32xf32>
    %cst = arith.constant dense<0.000000e+00> : vector<2x32xf32>
    %9 = vector.multi_reduction <add>, %8, %cst [1] : vector<2x8x32xf32> to vector<2x32xf32>
    %10 = arith.addf %6, %9 : vector<2x32xf32>
    %c0_8 = arith.constant 0 : index
    %c0_9 = arith.constant 0 : index
    %11 = vector.load %arg7[%c0_8, %c0_9] : memref<2x32xf32, #tpu.memory_space<vmem>>, vector<2x32xf32>
    tpu.vector_store %arg7[%c0_8, %c0_9], %10 {strides = array<i32>} : memref<2x32xf32, #tpu.memory_space<vmem>>, vector<2x32xf32>,
    %c0_10 = arith.constant 0 : index
    %c0_11 = arith.constant 0 : index
    %12 = vector.load %arg8[%c0_10, %c0_11] : memref<2x1xf32, #tpu.memory_space<vmem>>, vector<2x1xf32>
    %cst_12 = arith.constant dense<0.000000e+00> : vector<2x1xf32>
    %13 = vector.multi_reduction <add>, %5, %cst_12 [1] : vector<2x8x1xf32> to vector<2x1xf32>
    %14 = arith.addf %12, %13 : vector<2x1xf32>
    %c0_13 = arith.constant 0 : index
    %c0_14 = arith.constant 0 : index
    %15 = vector.load %arg8[%c0_13, %c0_14] : memref<2x1xf32, #tpu.memory_space<vmem>>, vector<2x1xf32>
    tpu.vector_store %arg8[%c0_13, %c0_14], %14 {strides = array<i32>} : memref<2x1xf32, #tpu.memory_space<vmem>>, vector<2x1xf32>,
    %c0_i32_15 = arith.constant 0 : i32
    %16 = arith.cmpi eq, %arg1, %c0_i32_15 : i32
    %17 = arith.extui %16 : i1 to i32
    %c0_i32_16 = arith.constant 0 : i32
    %18 = arith.cmpi ne, %17, %c0_i32_16 : i32
    scf.if %18 {
      %c0_17 = arith.constant 0 : index
      %c0_18 = arith.constant 0 : index
      %19 = vector.load %arg7[%c0_17, %c0_18] : memref<2x32xf32, #tpu.memory_space<vmem>>, vector<2x32xf32>
      %c0_19 = arith.constant 0 : index
      %c0_20 = arith.constant 0 : index
      %20 = vector.load %arg8[%c0_19, %c0_20] : memref<2x1xf32, #tpu.memory_space<vmem>>, vector<2x1xf32>
      %cst_21 = arith.constant 1.000000e+00 : f32
      %21 = vector.broadcast %cst_21 : f32 to vector<2x1xf32>
      %22 = arith.maximumf %20, %21 : vector<2x1xf32>
      %23 = vector.broadcast %22 : vector<2x1xf32> to vector<2x32xf32>
      %24 = arith.divf %19, %23 : vector<2x32xf32>
      %c0_22 = arith.constant 0 : index
      %c0_23 = arith.constant 0 : index
      %25 = vector.load %arg4[%c0_22, %c0_23] : memref<1x32xf32, #tpu.memory_space<vmem>>, vector<1x32xf32>
      %26 = vector.broadcast %25 : vector<1x32xf32> to vector<2x32xf32>
      %27 = arith.mulf %24, %26 : vector<2x32xf32>
      %cst_24 = arith.constant dense<0.000000e+00> : vector<2xf32>
      %28 = vector.multi_reduction <add>, %27, %cst_24 [1] : vector<2x32xf32> to vector<2xf32>
      %29 = vector.shape_cast %28 : vector<2xf32> to vector<2x1xf32>
      %c0_25 = arith.constant 0 : index
      %c0_26 = arith.constant 0 : index
      %30 = vector.load %arg5[%c0_25, %c0_26] : memref<1x1xf32, #tpu.memory_space<vmem>>, vector<1x1xf32>
      %31 = vector.broadcast %30 : vector<1x1xf32> to vector<2x1xf32>
      %32 = arith.addf %29, %31 : vector<2x1xf32>
      %cst_27 = arith.constant 0.000000e+00 : f32
      %33 = vector.broadcast %cst_27 : f32 to vector<2x1xf32>
      %34 = arith.subf %33, %32 : vector<2x1xf32>
      %35 = math.exp %34 : vector<2x1xf32>
      %cst_28 = arith.constant 1.000000e+00 : f32
      %36 = vector.broadcast %cst_28 : f32 to vector<2x1xf32>
      %37 = arith.addf %36, %35 : vector<2x1xf32>
      %cst_29 = arith.constant 1.000000e+00 : f32
      %38 = vector.broadcast %cst_29 : f32 to vector<2x1xf32>
      %39 = arith.divf %38, %37 : vector<2x1xf32>
      %c0_30 = arith.constant 0 : index
      %c0_31 = arith.constant 0 : index
      %40 = vector.load %arg6[%c0_30, %c0_31] : memref<2x1xf32, #tpu.memory_space<vmem>>, vector<2x1xf32>
      tpu.vector_store %arg6[%c0_30, %c0_31], %39 {strides = array<i32>} : memref<2x1xf32, #tpu.memory_space<vmem>>, vector<2x1xf32>,
    } else {
    }
    return
  }
  func.func @transform_0(%arg0: i32, %arg1: i32) -> (i32, i32, i32) {
    %c0_i32 = arith.constant 0 : i32
    %c0_i32_0 = arith.constant 0 : i32
    return %arg0, %arg1, %c0_i32 : i32, i32, i32
  }
  func.func @transform_1(%arg0: i32, %arg1: i32) -> (i32, i32, i32) {
    %c0_i32 = arith.constant 0 : i32
    %c0_i32_0 = arith.constant 0 : i32
    return %arg0, %arg1, %c0_i32 : i32, i32, i32
  }
  func.func @transform_2(%arg0: i32, %arg1: i32) -> (i32, i32) {
    %c0_i32 = arith.constant 0 : i32
    %c0_i32_0 = arith.constant 0 : i32
    %c0_i32_1 = arith.constant 0 : i32
    return %c0_i32, %c0_i32_0 : i32, i32
  }
  func.func @transform_3(%arg0: i32, %arg1: i32) -> (i32, i32) {
    %c0_i32 = arith.constant 0 : i32
    %c0_i32_0 = arith.constant 0 : i32
    %c0_i32_1 = arith.constant 0 : i32
    return %c0_i32, %c0_i32_0 : i32, i32
  }
  func.func @transform_4(%arg0: i32, %arg1: i32) -> (i32, i32) {
    %c0_i32 = arith.constant 0 : i32
    %c0_i32_0 = arith.constant 0 : i32
    return %arg0, %c0_i32 : i32, i32
  }
}

</mosaic_0001>

<bundles_post_ra>
// kernel: tpu_custom_call.1
= control target key start
LH: loop header
LB: loop body
LE: loop exit
PB: predicated region body
PF: predicated region fallthrough
CT: control target
= control target key end

     0   :  { %vm70_vm0 = vcmask 7168   ;;  %vm25_vm1 = vcmask 1024   ;;  %v171_v0 = vmov 0   ;;  %v172_v2 = vmov 0.0   ;;  %s224_s1 = inlined_call_operand.vmem [shape: f32[2,8,1], index: 1, kind: input, shape index: {}]   ;;  %s225_s2 = inlined_call_operand.vmem [shape: f32[1,32], index: 2, kind: input, shape index: {}]   ;;  %s226_s0 = inlined_call_operand.vmem [shape: bf16[2,8,32], index: 0, kind: input, shape index: {}]   ;;  %s227_s3 = inlined_call_operand.<no memory space> [shape: f32[1,1], index: 3, kind: input, shape index: {}]   ;;  %s228_s4 = inlined_call_operand.vmem [shape: f32[2,1], index: 4, kind: output, shape index: {}]  }
   0x1   :  { %161 = vset.pattern.permute.xlu0 %v171_v0  ;;  %v31_v1 = vld [vmem:[%s224_s1] sm:$0xff]  ;;  %26 = vst.msk [vmem:[#allocation3] sm:$0x3] %vm25_vm1, %v172_v2  ;;  %v32_v3 = vld [vmem:[%s224_s1 + $0x8] sm:$0xff]  ;;  %162 = vset.pattern.permute.xlu1 %v171_v0  ;;  %vm63_vm2 = vcmask 1041409   ;;  %vm23_vm3 = vcmask 254976   ;;  %v9_v39 = vstv %s227_s3 }
   0x2   :  { %36 = vperm.xlu0 %161, %v31_v1   ;;  %v71_v4 = vsel %vm70_vm0, %v31_v1, 0.0  ;;  %v78_v5 = vsel %vm70_vm0, %v32_v3, 0.0  ;;  %24 = vst.msk [vmem:[#allocation2] sm:$0x3] %vm23_vm3, %v172_v2  ;;  %v156_v23 = vld [vmem:[%s226_s0] sm:$0xff]   ;;  %vm46_vm4 = vcmask 261120  }
   0x3   :  { %v72_v6 = vrot.slane %v71_v4, 4  ;;  %v79_v7 = vrot.slane %v78_v5, 4  ;;  %v157_v24 = vunpack.c.l.bf16 %v156_v23  ;;  %v158_v29 = vunpack.c.h.bf16 %v156_v23  ;;  %10 = vst [vmem:[#allocation4] sm:$0x1] %v9_v39  ;;  %v163_v58 = vld [vmem:[%s225_s2] ss:$0 sm:$0xff] }
   0x5   :  { %v73_v8 = vadd.f32 %v72_v6, %v71_v4  ;;  %v80_v9 = vadd.f32 %v79_v7, %v78_v5 }
   0x7   :  { %v74_v10 = vrot.slane %v73_v8, 2  ;;  %v81_v11 = vrot.slane %v80_v9, 2 }
   0x8   :  { %v69_v17 = vld [vmem:[#allocation3] sm:$0x3] }
   0x9   :  { %v75_v12 = vadd.f32 %v74_v10, %v73_v8  ;;  %v82_v13 = vadd.f32 %v81_v11, %v80_v9  ;;  %v33_v45 = vld [vmem:[#allocation2] sm:$0x3] }
   0xa   :  { %41 = vperm.xlu0 %161, %v32_v3   ;;  %v164_v0 = vld [vmem:[#allocation4] ss:$0 sm:$0xff] }
   0xb   :  { %v76_v14 = vrot.slane %v75_v12, 1  ;;  %v83_v15 = vrot.slane %v82_v13, 1 }
   0xd   :  { %v77_v16 = vadd.f32 %v76_v14, %v75_v12  ;;  %v84_v18 = vadd.f32 %v83_v15, %v82_v13 }
   0xf   :  { %v87_v19 = vsel %vm63_vm2, %v84_v18, %v77_v16 }
  0x10   :  { %v89_v20 = vadd.f32 %v87_v19, %v69_v17 }
  0x12   :  { %91 = vst.msk [vmem:[#allocation3] sm:$0x3] %vm25_vm1, %v89_v20 }
  0x19   :  { %v96_v21 = vld [vmem:[#allocation3] sm:$0x3] }
  0x1a   :  { %v97_v22 = vmax.f32 %v96_v21, 1.0 }
  0x1c   :  { %100 = vperm.xlu1 %162, %v97_v22  }
  0x74   :  { %v37_v25 = vpop.permute.xlu0 %36 }
  0x75   :  { %v44_v26 = vmul.f32 %v157_v24, %v37_v25 }
  0x77   :  { %v47_v27 = vsel %vm46_vm4, %v44_v26, 0.0 }
  0x78   :  { %v48_v28 = vrot.slane %v47_v27, 4 }
  0x7a   :  { %v49_v30 = vadd.f32 %v48_v28, %v47_v27 }
  0x7c   :  { %v42_v31 = vpop.permute.xlu0 %41  ;;  %v50_v33 = vrot.slane %v49_v30, 2 }
  0x7d   :  { %v45_v32 = vmul.f32 %v158_v29, %v42_v31 }
  0x7e   :  { %v51_v36 = vadd.f32 %v50_v33, %v49_v30 }
  0x7f   :  { %v54_v34 = vsel %vm46_vm4, %v45_v32, 0.0 }
  0x80   :  { %v55_v35 = vrot.slane %v54_v34, 4  ;;  %v52_v40 = vrot.slane %v51_v36, 1 }
  0x82   :  { %v56_v37 = vadd.f32 %v55_v35, %v54_v34  ;;  %v53_v43 = vadd.f32 %v52_v40, %v51_v36 }
  0x84   :  { %v57_v38 = vrot.slane %v56_v37, 2 }
  0x86   :  { %v58_v41 = vadd.f32 %v57_v38, %v56_v37 }
  0x88   :  { %v59_v42 = vrot.slane %v58_v41, 1 }
  0x8a   :  { %v60_v44 = vadd.f32 %v59_v42, %v58_v41 }
  0x8c   :  { %v64_v46 = vsel %vm63_vm2, %v60_v44, %v53_v43 }
  0x8d   :  { %v66_v47 = vadd.f32 %v64_v46, %v33_v45 }
  0x8e   :  { %v101_v48 = vpop.permute.xlu1 %100 }
  0x8f   :  { %165 = vrcp.f32 %v101_v48  ;;  %68 = vst.msk [vmem:[#allocation2] sm:$0x3] %vm23_vm3, %v66_v47  ;;  %v114_v52 = vand.u32 2147483648, %v101_v48  ;;  %v112_v54 = vand.u32 2147483647, %v101_v48  ;;  %vm108_vm6 = vweird.f32 %v101_v48 }
  0x91   :  { %v115_v56 = vor.u32 1.1754944e-38, %v114_v52  ;;  %vm113_vm8 = vcmp.eq.f32.partialorder %v112_v54, 8.507059e+37 }
  0x95   :  { %v166_v49 = vpop.eup %165 }
  0x96   :  { %v104_v50 = vmul.f32 %v166_v49, %v101_v48  ;;  %vm109_vm5 = vweird.f32 %v166_v49  ;;  %v95_v59 = vld [vmem:[#allocation2] sm:$0x3] }
  0x97   :  { %vm110_vm7 = vmor %vm108_vm6, %vm109_vm5 }
  0x98   :  { %v105_v51 = vsub.f32 1.0, %v104_v50 }
  0x9a   :  { %v106_v53 = vmul.f32 %v166_v49, %v105_v51 }
  0x9c   :  { %v107_v55 = vadd.f32 %v166_v49, %v106_v53 }
  0x9e   :  { %v111_v57 = vsel %vm110_vm7, %v166_v49, %v107_v55 }
  0x9f   :  { %v116_v60 = vsel %vm113_vm8, %v115_v56, %v111_v57 }
  0xa0   :  { %v117_v61 = vmul.f32 %v116_v60, %v95_v59 }
  0xa2   :  { %v122_v62 = vmul.f32 %v163_v58, %v117_v61 }
  0xa4   :  { %v123_v63 = vsel %vm23_vm3, %v122_v62, 0.0 }
  0xa5   :  { %124 = vadd.xlane.f32.xlu1 %v123_v63 }
 0x118   :  { %v125_v1 = vpop.xlane.xlu1 %124 }
 0x119   :  { %v130_v2 = vadd.f32 %v164_v0, %v125_v1 }
 0x11b   :  { %v131_v3 = vsub.f32 0.0, %v130_v2 }
 0x11d   :  { %v132_v4 = vmul.f32 1.442695, %v131_v3 }
 0x11f   :  { %167 = vpow2.f32 %v132_v4 }
 0x125   :  { %v168_v5 = vpop.eup %167 }
 0x126   :  { %v134_v6 = vadd.f32 1.0, %v168_v5 }
 0x128   :  { %169 = vrcp.f32 %v134_v6  ;;  %v146_v10 = vand.u32 2147483648, %v134_v6  ;;  %v144_v12 = vand.u32 2147483647, %v134_v6  ;;  %vm140_vm10 = vweird.f32 %v134_v6 }
 0x12a   :  { %v147_v14 = vor.u32 1.1754944e-38, %v146_v10  ;;  %vm145_vm12 = vcmp.eq.f32.partialorder %v144_v12, 8.507059e+37 }
 0x12e   :  { %v170_v7 = vpop.eup %169 }
 0x12f   :  { %v136_v8 = vmul.f32 %v170_v7, %v134_v6  ;;  %vm141_vm9 = vweird.f32 %v170_v7 }
 0x130   :  { %vm142_vm11 = vmor %vm140_vm10, %vm141_vm9 }
 0x131   :  { %v137_v9 = vsub.f32 1.0, %v136_v8 }
 0x133   :  { %v138_v11 = vmul.f32 %v170_v7, %v137_v9 }
 0x135   :  { %v139_v13 = vadd.f32 %v170_v7, %v138_v11 }
 0x137   :  { %v143_v15 = vsel %vm142_vm11, %v170_v7, %v139_v13 }
 0x138   :  { %v148_v16 = vsel %vm145_vm12, %v147_v14, %v143_v15 }
 0x139   :  { %150 = vst.msk [vmem:[%s228_s4] sm:$0x3] %vm25_vm1, %v148_v16 }

</bundles_post_ra>
